<compile_context>
chip_gen: v7x
topology: tpu7x:2x2x1
jax: 0.10.0
libtpu: 0.0.40
codegen_flags: <defaults>
</compile_context>

<pallas_src>
import functools
import math

import numpy as np
import jax
import jax.numpy as jnp
from jax.experimental import pallas as pl
from jax.experimental.pallas import tpu as pltpu


# --------------------------- host-side filter matrices -----------------------


def _cubic_w(x, a=-0.75):
    x = abs(float(x))
    if x <= 1.0:
        return (a + 2.0) * x**3 - (a + 3.0) * x**2 + 1.0
    if x < 2.0:
        return a * x**3 - 5.0 * a * x**2 + 8.0 * a * x - 4.0 * a
    return 0.0


def bicubic_up2_matrix(n):
    """(2n, n): F.interpolate(scale_factor=2, mode='bicubic',
    align_corners=False) along one axis (PyTorch clamps border indices)."""
    m = np.zeros((2 * n, n), dtype=np.float64)
    for j in range(2 * n):
        s = (j + 0.5) / 2.0 - 0.5
        f = math.floor(s)
        t = s - f
        for k in range(-1, 3):
            idx = min(max(f + k, 0), n - 1)
            m[j, idx] += _cubic_w(k - t)
    return m


def gaussian_blur_matrix(n, ksize=5, sigma=1.5):
    """(n, n): kornia.gaussian_blur2d 1-D separable gaussian, reflect border."""
    x = np.arange(ksize, dtype=np.float64) - ksize // 2
    g = np.exp(-(x * x) / (2.0 * sigma * sigma))
    g = g / g.sum()
    m = np.zeros((n, n), dtype=np.float64)
    for i in range(n):
        for k in range(ksize):
            j = i + k - ksize // 2
            if j < 0:
                j = -j
            if j > n - 1:
                j = 2 * (n - 1) - j
            m[i, j] += g[k]
    return m


@functools.lru_cache(maxsize=None)
def _filter_mats(h, w):
    """Host-built (cached) separable filter matrices, gaussian folded into the
    bicubic upsample.  The dense (2H,2H)/(2W,2W) blur matrices never leave the
    host."""
    u_h = bicubic_up2_matrix(h)            # (2H, H)
    u_w = bicubic_up2_matrix(w)            # (2W, W)
    b_h = gaussian_blur_matrix(2 * h)      # (2H, 2H)  host-only
    b_w = gaussian_blur_matrix(2 * w)      # (2W, 2W)  host-only
    uh = np.asarray(u_h, dtype=np.float32)           # (2H, H)
    uwt = np.asarray(u_w.T, dtype=np.float32)        # (W, 2W)
    ch = np.asarray(b_h @ u_h, dtype=np.float32)     # (2H, H)
    cwt = np.asarray((b_w @ u_w).T, dtype=np.float32)  # (W, 2W)
    return uh, uwt, ch, cwt


# ----------------------------------- kernel ----------------------------------


def _distan_kernel(in_ref, sr_ref, hr_ref, uh_ref, uwt_ref, ch_ref, cwt_ref,
                   out_ref):
    bt, h, w = in_ref.shape              # (Bt, H, W) green channel of `input`
    h2, w2 = 2 * h, 2 * w

    uh = uh_ref[...]                     # (2H, H)  bicubic rows            bf16
    uwt = uwt_ref[...]                   # (W, 2W)  bicubic cols (T)        bf16
    ch = ch_ref[...]                     # (2H, H)  gaussian∘bicubic rows   bf16
    cwt = cwt_ref[...]                   # (W, 2W)  gaussian∘bicubic cols(T)bf16

    # ---- stage A: vertical (row-side) filtering.  Batch folded into the MXU
    # N dimension as per-image column blocks:  x_cols = [x_0 | x_1 | ...].
    x = in_ref[...].astype(jnp.bfloat16)                       # (Bt, H, W)
    if bt == 1:
        x_cols = x.reshape(h, w)
    else:
        x_cols = jnp.concatenate([x[b] for b in range(bt)], axis=1)  # (H, Bt*W)
    up_rows = jnp.dot(uh, x_cols, preferred_element_type=jnp.float32)  # (2H, Bt*W)
    bl_rows = jnp.dot(ch, x_cols, preferred_element_type=jnp.float32)  # (2H, Bt*W)

    # ---- relayout the small bf16 intermediates to batch-major rows so the
    # second matmul, the untangle and the reduction all run fully batched
    # (no per-image loop, no relayout of any f32 (2H,2W)-sized data).
    def _rows(t):                        # (2H, Bt*W) -> (Bt*2H, W), bf16
        tb = t.astype(jnp.bfloat16)
        if bt == 1:
            return tb
        return jnp.concatenate([tb[:, b * w:(b + 1) * w] for b in range(bt)],
                               axis=0)

    up_rows_b = _rows(up_rows)
    bl_rows_b = _rows(bl_rows)

    # ---- stage B: horizontal (column-side) filtering.  Batch folded into M.
    up = jnp.dot(up_rows_b, uwt, preferred_element_type=jnp.float32)   # (Bt*2H, 2W)
    rlp = jnp.dot(bl_rows_b, cwt, preferred_element_type=jnp.float32) - up

    # ---- untangle both hr and sr (upcasts hoisted; fully batched).
    hr_g = hr_ref[...].astype(jnp.float32).reshape(bt * h2, w2)
    sr_g = sr_ref[...].astype(jnp.float32).reshape(bt * h2, w2)

    def untangle(xg):
        # torch: rp = residual_lp*(x_G - up) + 0.5
        #        rp < 0.5 -> 1 ; rp == 1 -> 1 ; rp == 0.5 -> 0.5 ; else -> 0
        # The +0.5 is folded into the comparisons (one VPU add/element saved):
        #        p < 0 -> 1 ; p == 0.5 -> 1 ; p == 0 -> 0.5 ; else -> 0
        p = rlp * (xg - up)
        inner = jnp.where(p == 0.0, 0.5, 0.0)
        return jnp.where(jnp.logical_or(p < 0.0, p == 0.5), 1.0, inner)

    d = untangle(sr_g) - untangle(hr_g)
    dsq = d * d                          # entries in {0, 0.25, 1}: exact in bf16

    # Lane reduction on the MXU (free slot); per-element dsq values are exact
    # in bf16 regardless of the batch tile (no batch pre-accumulation).
    ones_col = jnp.ones((w2, 1), jnp.bfloat16)
    row_sse = jnp.dot(dsq.astype(jnp.bfloat16), ones_col,
                      preferred_element_type=jnp.float32)      # (Bt*2H, 1)
    out_ref[0] = jnp.sum(row_sse, axis=0, keepdims=True)       # (1, 1) SSE


# ----------------------------------- wrapper ----------------------------------


def _physical_vmem_bytes():
    """Per-TensorCore VMEM capacity; conservative (v7x) fallback if the query
    is unavailable."""
    try:
        cap = int(pltpu.get_tpu_info().vmem_capacity_bytes)
        if cap > 0:
            return cap
    except Exception:
        pass
    return 64 << 20


def _per_item_bytes(h, w, in_isz, sr_isz, hr_isz):
    """VMEM bytes per batch item: double-buffered pipeline blocks (green
    channel only) plus in-kernel temporaries (batched f32 untangle values and
    bf16 matmul intermediates)."""
    hw = h * w
    blocks = 2 * hw * (in_isz + 4 * (sr_isz + hr_isz))
    temps = 136 * hw                    # ~6 f32 (2H,2W) live values + bf16 temps
    return blocks + temps


def _choose_bt(n, h, w, in_isz, sr_isz, hr_isz, budget_bytes):
    """Batch tile: biggest tile the per-generation VMEM budget allows (bigger
    DMA blocks = the HBM-roofline lever on v5e/v6e), with >= 2 grid steps so
    v7x's two TensorCores both get work, and a cap on trace size."""
    per_item = _per_item_bytes(h, w, in_isz, sr_isz, hr_isz)
    bt = int(max(1, min(n, budget_bytes // max(per_item, 1), 64)))
    if n >= 2:
        bt = max(1, min(bt, n // 2))
    # Prefer an exact divisor of n within 25% of the target (avoids the
    # batch-padding copy); otherwise keep bt and pad the remainder.
    if n % bt:
        for d in range(bt, 0, -1):
            if n % d == 0 and 4 * d >= 3 * bt:
                return d
    return bt


def _const_spec(shape):
    """Grid-invariant filter constants: single-buffer them (constant index_map,
    double buffering buys nothing)."""
    idx = lambda i: (0, 0)
    try:
        return pl.BlockSpec(shape, idx, pipeline_mode=pl.Buffered(1))
    except Exception:
        return pl.BlockSpec(shape, idx)


def _distan_loss(sr, hr, inp):
    """sr, hr: (N, C, 2H, 2W); inp: (N, C, H, W) -- NCHW, any float dtype
    (bf16 sr/hr are accepted as-is and halve HBM traffic)."""
    n, c, h, w = inp.shape
    h2, w2 = 2 * h, 2 * w
    assert c >= 2 and sr.shape[1] >= 2 and hr.shape[1] >= 2
    assert sr.shape[0] == n and hr.shape[0] == n
    assert sr.shape[2:] == (h2, w2) and hr.shape[2:] == (h2, w2)

    phys = _physical_vmem_bytes()
    budget = (phys * 3) // 8            # ~48 MiB on v5e/v6e, ~24 MiB on v7x
    bt = _choose_bt(n, h, w, inp.dtype.itemsize, sr.dtype.itemsize,
                    hr.dtype.itemsize, budget)
    steps = -(-n // bt)
    n_pad = steps * bt
    if n_pad != n:
        # Zero-padded images contribute exactly 0 to the SSE (p == 0 -> both
        # masks 0.5 -> d == 0); the mean below divides by the true N.
        pad = ((0, n_pad - n), (0, 0), (0, 0), (0, 0))
        inp_p, sr_p, hr_p = jnp.pad(inp, pad), jnp.pad(sr, pad), jnp.pad(hr, pad)
    else:
        inp_p, sr_p, hr_p = inp, sr, hr

    uh_np, uwt_np, ch_np, cwt_np = _filter_mats(h, w)     # cached on host
    uh = jnp.asarray(uh_np, jnp.bfloat16)
    uwt = jnp.asarray(uwt_np, jnp.bfloat16)
    ch = jnp.asarray(ch_np, jnp.bfloat16)
    cwt = jnp.asarray(cwt_np, jnp.bfloat16)

    # Always set the scoped-VMEM limit (v5e default is only 16 MiB) and clamp
    # it to 3/4 of physical VMEM (~48 MiB ceiling on v7x, ~96 MiB v5e/v6e).
    consts_bytes = 2 * (8 * h * h + 8 * w * w)
    vmem_est = consts_bytes + bt * _per_item_bytes(
        h, w, inp.dtype.itemsize, sr.dtype.itemsize, hr.dtype.itemsize)
    vmem_limit = int(min(max(vmem_est * 3 // 2, 32 << 20), (phys * 3) // 4))

    per_block_sse = pl.pallas_call(
        _distan_kernel,
        out_shape=jax.ShapeDtypeStruct((steps, 1, 1), jnp.float32),
        grid_spec=pltpu.PrefetchScalarGridSpec(
            num_scalar_prefetch=0,
            grid=(steps,),
            in_specs=[
                # Green channel (index 1) selected by the BlockSpec itself;
                # no wrapper-side slice / extra HBM pass.
                pl.BlockSpec((bt, pl.Squeezed(), h, w), lambda i: (i, 1, 0, 0)),
                pl.BlockSpec((bt, pl.Squeezed(), h2, w2),
                             lambda i: (i, 1, 0, 0)),
                pl.BlockSpec((bt, pl.Squeezed(), h2, w2),
                             lambda i: (i, 1, 0, 0)),
                _const_spec((h2, h)),
                _const_spec((w, w2)),
                _const_spec((h2, h)),
                _const_spec((w, w2)),
            ],
            out_specs=pl.BlockSpec((1, 1, 1), lambda i: (i, 0, 0)),
        ),
        compiler_params=pltpu.CompilerParams(
            dimension_semantics=("parallel",),
            vmem_limit_bytes=vmem_limit,
        ),
    )(inp_p, sr_p, hr_p, uh, uwt, ch, cwt)

    # loss = F.mse_loss(sr_untan, hr_untan): mean over N * 1 * 2H * 2W elems.
    return jnp.sum(per_block_sse) / (n * h2 * w2)


# jit so constant construction / upload and pallas_call tracing happen once
# per shape signature.  (cntElement in the reference module is dead code for
# forward() and is intentionally not implemented.)
distan_loss = jax.jit(_distan_loss)


if __name__ == "__main__":
    key = jax.random.PRNGKey(0)
    k1, k2, k3 = jax.random.split(key, 3)
    N, C, H, W = 2, 3, 16, 16
    inp = jax.random.uniform(k1, (N, C, H, W), dtype=jnp.float32)
    hr = jax.random.uniform(k2, (N, C, 2 * H, 2 * W), dtype=jnp.float32)
    sr = jax.random.uniform(k3, (N, C, 2 * H, 2 * W), dtype=jnp.float32)

    loss = distan_loss(sr, hr, inp)
    jax.block_until_ready(loss)
    print("KERNEL_OK")
</pallas_src>

<mosaic_0001>
module attributes {stable_mosaic.version = 11 : i64} {
  func.func @_distan_kernel(%arg0: i32, %arg1: memref<1x1x16x16xf32, #tpu.memory_space<vmem>>, %arg2: memref<1x1x32x32xf32, #tpu.memory_space<vmem>>, %arg3: memref<1x1x32x32xf32, #tpu.memory_space<vmem>>, %arg4: memref<32x16xbf16, #tpu.memory_space<vmem>>, %arg5: memref<16x32xbf16, #tpu.memory_space<vmem>>, %arg6: memref<32x16xbf16, #tpu.memory_space<vmem>>, %arg7: memref<16x32xbf16, #tpu.memory_space<vmem>>, %arg8: memref<1x1x1xf32, #tpu.memory_space<vmem>>) attributes {dimension_semantics = [#tpu.dimension_semantics<parallel>], iteration_bounds = array<i64: 2>, scalar_prefetch = 0 : i64, scratch_operands = 0 : i64, tpu.core_type = #tpu.core_type<tc>, window_params = [{transform_indices = @transform_0, window_bounds = array<i64: 1, 1, 16, 16>}, {transform_indices = @transform_1, window_bounds = array<i64: 1, 1, 32, 32>}, {transform_indices = @transform_2, window_bounds = array<i64: 1, 1, 32, 32>}, {pipeline_mode = #tpu.pipeline_mode<synchronous>, transform_indices = @transform_3, window_bounds = array<i64: 32, 16>}, {pipeline_mode = #tpu.pipeline_mode<synchronous>, transform_indices = @transform_4, window_bounds = array<i64: 16, 32>}, {pipeline_mode = #tpu.pipeline_mode<synchronous>, transform_indices = @transform_5, window_bounds = array<i64: 32, 16>}, {pipeline_mode = #tpu.pipeline_mode<synchronous>, transform_indices = @transform_6, window_bounds = array<i64: 16, 32>}, {transform_indices = @transform_7, window_bounds = array<i64: 1, 1, 1>}]} {
    %c0 = arith.constant 0 : index
    %c0_0 = arith.constant 0 : index
    %0 = vector.load %arg4[%c0, %c0_0] : memref<32x16xbf16, #tpu.memory_space<vmem>>, vector<32x16xbf16>
    %c0_1 = arith.constant 0 : index
    %c0_2 = arith.constant 0 : index
    %1 = vector.load %arg5[%c0_1, %c0_2] : memref<16x32xbf16, #tpu.memory_space<vmem>>, vector<16x32xbf16>
    %c0_3 = arith.constant 0 : index
    %c0_4 = arith.constant 0 : index
    %2 = vector.load %arg6[%c0_3, %c0_4] : memref<32x16xbf16, #tpu.memory_space<vmem>>, vector<32x16xbf16>
    %c0_5 = arith.constant 0 : index
    %c0_6 = arith.constant 0 : index
    %3 = vector.load %arg7[%c0_5, %c0_6] : memref<16x32xbf16, #tpu.memory_space<vmem>>, vector<16x32xbf16>
    %c0_7 = arith.constant 0 : index
    %c0_8 = arith.constant 0 : index
    %c0_9 = arith.constant 0 : index
    %c0_10 = arith.constant 0 : index
    %4 = vector.load %arg1[%c0_7, %c0_8, %c0_9, %c0_10] : memref<1x1x16x16xf32, #tpu.memory_space<vmem>>, vector<1x1x16x16xf32>
    %5 = vector.shape_cast %4 : vector<1x1x16x16xf32> to vector<1x16x16xf32>
    %6 = arith.truncf %5 : vector<1x16x16xf32> to vector<1x16x16xbf16>
    %7 = vector.shape_cast %6 : vector<1x16x16xbf16> to vector<16x16xbf16>
    %cst = arith.constant dense<0.000000e+00> : vector<32x16xf32>
    %8 = tpu.matmul %0, %7, %cst {dimension_numbers = #tpu.dot_dimension_numbers<[1], [0], [0], [1], [0, 0, 1, 1], [], []>} : vector<32x16xbf16>, vector<16x16xbf16>, vector<32x16xf32> -> vector<32x16xf32>
    %cst_11 = arith.constant dense<0.000000e+00> : vector<32x16xf32>
    %9 = tpu.matmul %2, %7, %cst_11 {dimension_numbers = #tpu.dot_dimension_numbers<[1], [0], [0], [1], [0, 0, 1, 1], [], []>} : vector<32x16xbf16>, vector<16x16xbf16>, vector<32x16xf32> -> vector<32x16xf32>
    %10 = arith.truncf %8 : vector<32x16xf32> to vector<32x16xbf16>
    %11 = arith.truncf %9 : vector<32x16xf32> to vector<32x16xbf16>
    %cst_12 = arith.constant dense<0.000000e+00> : vector<32x32xf32>
    %12 = tpu.matmul %10, %1, %cst_12 {dimension_numbers = #tpu.dot_dimension_numbers<[1], [0], [0], [1], [0, 0, 1, 1], [], []>} : vector<32x16xbf16>, vector<16x32xbf16>, vector<32x32xf32> -> vector<32x32xf32>
    %cst_13 = arith.constant dense<0.000000e+00> : vector<32x32xf32>
    %13 = tpu.matmul %11, %3, %cst_13 {dimension_numbers = #tpu.dot_dimension_numbers<[1], [0], [0], [1], [0, 0, 1, 1], [], []>} : vector<32x16xbf16>, vector<16x32xbf16>, vector<32x32xf32> -> vector<32x32xf32>
    %14 = arith.subf %13, %12 : vector<32x32xf32>
    %c0_14 = arith.constant 0 : index
    %c0_15 = arith.constant 0 : index
    %c0_16 = arith.constant 0 : index
    %c0_17 = arith.constant 0 : index
    %15 = vector.load %arg3[%c0_14, %c0_15, %c0_16, %c0_17] : memref<1x1x32x32xf32, #tpu.memory_space<vmem>>, vector<1x1x32x32xf32>
    %16 = vector.shape_cast %15 : vector<1x1x32x32xf32> to vector<1x32x32xf32>
    %17 = vector.shape_cast %16 : vector<1x32x32xf32> to vector<32x32xf32>
    %c0_18 = arith.constant 0 : index
    %c0_19 = arith.constant 0 : index
    %c0_20 = arith.constant 0 : index
    %c0_21 = arith.constant 0 : index
    %18 = vector.load %arg2[%c0_18, %c0_19, %c0_20, %c0_21] : memref<1x1x32x32xf32, #tpu.memory_space<vmem>>, vector<1x1x32x32xf32>
    %19 = vector.shape_cast %18 : vector<1x1x32x32xf32> to vector<1x32x32xf32>
    %20 = vector.shape_cast %19 : vector<1x32x32xf32> to vector<32x32xf32>
    %21 = arith.subf %20, %12 : vector<32x32xf32>
    %22 = arith.mulf %14, %21 : vector<32x32xf32>
    %cst_22 = arith.constant 0.000000e+00 : f32
    %23 = vector.broadcast %cst_22 : f32 to vector<32x32xf32>
    %24 = arith.cmpf oeq, %22, %23 : vector<32x32xf32>
    %cst_23 = arith.constant 5.000000e-01 : f32
    %cst_24 = arith.constant 0.000000e+00 : f32
    %25 = vector.broadcast %cst_23 : f32 to vector<32x32xf32>
    %26 = vector.broadcast %cst_24 : f32 to vector<32x32xf32>
    %27 = arith.select %24, %25, %26 : vector<32x32xi1>, vector<32x32xf32>
    %cst_25 = arith.constant 0.000000e+00 : f32
    %28 = vector.broadcast %cst_25 : f32 to vector<32x32xf32>
    %29 = arith.cmpf olt, %22, %28 : vector<32x32xf32>
    %cst_26 = arith.constant 5.000000e-01 : f32
    %30 = vector.broadcast %cst_26 : f32 to vector<32x32xf32>
    %31 = arith.cmpf oeq, %22, %30 : vector<32x32xf32>
    %32 = arith.ori %29, %31 : vector<32x32xi1>
    %cst_27 = arith.constant 1.000000e+00 : f32
    %33 = vector.broadcast %cst_27 : f32 to vector<32x32xf32>
    %34 = arith.select %32, %33, %27 : vector<32x32xi1>, vector<32x32xf32>
    %35 = arith.subf %17, %12 : vector<32x32xf32>
    %36 = arith.mulf %14, %35 : vector<32x32xf32>
    %cst_28 = arith.constant 0.000000e+00 : f32
    %37 = vector.broadcast %cst_28 : f32 to vector<32x32xf32>
    %38 = arith.cmpf oeq, %36, %37 : vector<32x32xf32>
    %cst_29 = arith.constant 5.000000e-01 : f32
    %cst_30 = arith.constant 0.000000e+00 : f32
    %39 = vector.broadcast %cst_29 : f32 to vector<32x32xf32>
    %40 = vector.broadcast %cst_30 : f32 to vector<32x32xf32>
    %41 = arith.select %38, %39, %40 : vector<32x32xi1>, vector<32x32xf32>
    %cst_31 = arith.constant 0.000000e+00 : f32
    %42 = vector.broadcast %cst_31 : f32 to vector<32x32xf32>
    %43 = arith.cmpf olt, %36, %42 : vector<32x32xf32>
    %cst_32 = arith.constant 5.000000e-01 : f32
    %44 = vector.broadcast %cst_32 : f32 to vector<32x32xf32>
    %45 = arith.cmpf oeq, %36, %44 : vector<32x32xf32>
    %46 = arith.ori %43, %45 : vector<32x32xi1>
    %cst_33 = arith.constant 1.000000e+00 : f32
    %47 = vector.broadcast %cst_33 : f32 to vector<32x32xf32>
    %48 = arith.select %46, %47, %41 : vector<32x32xi1>, vector<32x32xf32>
    %49 = arith.subf %34, %48 : vector<32x32xf32>
    %50 = arith.mulf %49, %49 : vector<32x32xf32>
    %cst_34 = arith.constant 1.000000e+00 : bf16
    %51 = vector.broadcast %cst_34 : bf16 to vector<32x1xbf16>
    %52 = arith.truncf %50 : vector<32x32xf32> to vector<32x32xbf16>
    %cst_35 = arith.constant dense<0.000000e+00> : vector<32x1xf32>
    %53 = tpu.matmul %52, %51, %cst_35 {dimension_numbers = #tpu.dot_dimension_numbers<[1], [0], [0], [1], [0, 0, 1, 1], [], []>} : vector<32x32xbf16>, vector<32x1xbf16>, vector<32x1xf32> -> vector<32x1xf32>
    %cst_36 = arith.constant dense<0.000000e+00> : vector<1xf32>
    %54 = vector.multi_reduction <add>, %53, %cst_36 [0] : vector<32x1xf32> to vector<1xf32>
    %55 = vector.shape_cast %54 : vector<1xf32> to vector<1x1xf32>
    %c0_37 = arith.constant 0 : index
    %c0_38 = arith.constant 0 : index
    %c0_39 = arith.constant 0 : index
    %56 = vector.load %arg8[%c0_37, %c0_38, %c0_39] : memref<1x1x1xf32, #tpu.memory_space<vmem>>, vector<1x1x1xf32>
    %57 = vector.shape_cast %56 : vector<1x1x1xf32> to vector<1x1xf32>
    %58 = vector.shape_cast %55 : vector<1x1xf32> to vector<1x1x1xf32>
    tpu.vector_store %arg8[%c0_37, %c0_38, %c0_39], %58 {strides = array<i32>} : memref<1x1x1xf32, #tpu.memory_space<vmem>>, vector<1x1x1xf32>,
    return
  }
  func.func @transform_0(%arg0: i32) -> (i32, i32, i32, i32) {
    %c1_i32 = arith.constant 1 : i32
    %c0_i32 = arith.constant 0 : i32
    %c0_i32_0 = arith.constant 0 : i32
    %c0_i32_1 = arith.constant 0 : i32
    return %arg0, %c1_i32, %c0_i32, %c0_i32_0 : i32, i32, i32, i32
  }
  func.func @transform_1(%arg0: i32) -> (i32, i32, i32, i32) {
    %c1_i32 = arith.constant 1 : i32
    %c0_i32 = arith.constant 0 : i32
    %c0_i32_0 = arith.constant 0 : i32
    %c0_i32_1 = arith.constant 0 : i32
    return %arg0, %c1_i32, %c0_i32, %c0_i32_0 : i32, i32, i32, i32
  }
  func.func @transform_2(%arg0: i32) -> (i32, i32, i32, i32) {
    %c1_i32 = arith.constant 1 : i32
    %c0_i32 = arith.constant 0 : i32
    %c0_i32_0 = arith.constant 0 : i32
    %c0_i32_1 = arith.constant 0 : i32
    return %arg0, %c1_i32, %c0_i32, %c0_i32_0 : i32, i32, i32, i32
  }
  func.func @transform_3(%arg0: i32) -> (i32, i32) {
    %c0_i32 = arith.constant 0 : i32
    %c0_i32_0 = arith.constant 0 : i32
    %c0_i32_1 = arith.constant 0 : i32
    return %c0_i32, %c0_i32_0 : i32, i32
  }
  func.func @transform_4(%arg0: i32) -> (i32, i32) {
    %c0_i32 = arith.constant 0 : i32
    %c0_i32_0 = arith.constant 0 : i32
    %c0_i32_1 = arith.constant 0 : i32
    return %c0_i32, %c0_i32_0 : i32, i32
  }
  func.func @transform_5(%arg0: i32) -> (i32, i32) {
    %c0_i32 = arith.constant 0 : i32
    %c0_i32_0 = arith.constant 0 : i32
    %c0_i32_1 = arith.constant 0 : i32
    return %c0_i32, %c0_i32_0 : i32, i32
  }
  func.func @transform_6(%arg0: i32) -> (i32, i32) {
    %c0_i32 = arith.constant 0 : i32
    %c0_i32_0 = arith.constant 0 : i32
    %c0_i32_1 = arith.constant 0 : i32
    return %c0_i32, %c0_i32_0 : i32, i32
  }
  func.func @transform_7(%arg0: i32) -> (i32, i32, i32) {
    %c0_i32 = arith.constant 0 : i32
    %c0_i32_0 = arith.constant 0 : i32
    %c0_i32_1 = arith.constant 0 : i32
    return %arg0, %c0_i32, %c0_i32_0 : i32, i32, i32
  }
}

</mosaic_0001>

<bundles_post_ra>
// kernel: _distan_loss.1
= control target key start
LH: loop header
LB: loop body
LE: loop exit
PB: predicated region body
PF: predicated region fallthrough
CT: control target
= control target key end

     0   :  { %s1600_s0 = inlined_call_operand.hbm [shape: f32[2,3,16,16], index: 0, kind: input, shape index: {}]   ;;  %s1601_s1 = inlined_call_operand.hbm [shape: f32[2,3,32,32], index: 1, kind: input, shape index: {}]   ;;  %s1602_s2 = inlined_call_operand.hbm [shape: f32[2,3,32,32], index: 2, kind: input, shape index: {}]   ;;  %s1603_s3 = inlined_call_operand.vmem [shape: bf16[32,16], index: 3, kind: input, shape index: {}]   ;;  %s1604_s4 = inlined_call_operand.hbm [shape: bf16[16,32], index: 4, kind: input, shape index: {}]   ;;  %s1605_s5 = inlined_call_operand.vmem [shape: bf16[32,16], index: 5, kind: input, shape index: {}]   ;;  %s1606_s6 = inlined_call_operand.vmem [shape: bf16[16,32], index: 6, kind: input, shape index: {}]   ;;  %s1607_s7 = inlined_call_operand.vmem [shape: f32[2,1,1], index: 7, kind: output, shape index: {}]  }
   0x1   :  { %1623 = sst [smem:[#allocation15_spill]] %s1601_s1 }
   0x2   :  { %1624 = sst [smem:[#allocation16_spill]] %s1606_s6 }
   0x3   :  { %1625 = sst [smem:[#allocation17_spill]] %s1607_s7 }
   0x4   :  { %12 = vsyncpa [#allocation3], 0 }
   0x5   :  { %14 = vsyncpa [#allocation3 + $0x1], 0 }
   0x6   :  { %15 = vsyncpa [#allocation5], 0 }
   0x7   :  { %17 = vsyncpa [#allocation5 + $0x1], 0 }
   0x8   :  { %18 = vsyncpa [#allocation8], 0  ;;  %s1308_s24 = smov 0   ;;  %s1310_s25 = smov 0  }
   0x9   :  { %s1312_s26 = smov 0   ;;  %s1314_s27 = smov 0  }
   0xa LB: > { %1626 = sst [smem:[#allocation12_spill]] %s1252_s26  ;;  %s1329_s28 = sadd.s32 1, %s1256_s27   ;;  %s1256_s27 = sphi %s1314_s27, %s1652_s27   ;;  %s1252_s26 = sphi %s1312_s26, %s1654_s26   ;;  %s1248_s25 = sphi %s1310_s25, %s1656_s25   ;;  %s1244_s24 = sphi %s1308_s24, %s1655_s24  }
   0xb   : > { %1627 = sst [smem:[#allocation13_spill]] %s1329_s28  ;;  %s31_s29 = sadd.s32 1, %s1252_s26 }
   0xc   : > { %s28_s30 = ssub.s32 %s1256_s27, %s1329_s28  ;;  %p38_p0 = scmp.ne.s32.totalorder %s1252_s26, %s1248_s25 }
   0xd   : > { %p29_p1 = scmp.eq.s32.totalorder %s28_s30, 0  ;;  %p39_p2 = scmp.eq.s32.totalorder %s1256_s27, 0 }
   0xe   : > { %p1046_p3 = scmp.lt.s32.totalorder %s1256_s27, 2  ;;  %s1342_s9 = sand.u32 1, %s1252_s26  }
   0xf   : > { %s1339_s8 = scalar_select %p29_p1, %s1252_s26, %s31_s29  }
  0x10   : > { %p40_p4 = por %p39_p2, %p38_p0  ;;  %s274_s11 = sand.u32 1, %s1256_s27  }
  0x11   : > { %1628 = sst [smem:[#allocation14_spill]] %s1339_s8  ;;  %s946_s12 = sshll.u32 %s1342_s9, 5 }
  0x12   : > { %p1344_p5 = pnand %p1046_p3, %p40_p4  ;;  %s1612_s13 = smul.u32 1536, %s1256_s27 }
  0x13   : > { %s278_s14 = scalar_lea.vmem [#allocation4], %s946_s12  ;;  %s1630_s1 = sld [smem:[#allocation15_spill]] }
  0x14   : > { %s1629_s10 = scalar_select %p1344_p5, 1, 0 }
  0x15   : > { %s286_s15 = sshll.u32 %s278_s14, 4  ;;  %s300_s19 = scalar_lea.vmem [#allocation6], %s946_s12  ;;  %s1351_s15 = int_to_ptr.vmem [resolvable:$true] %s286_s15 }
  0x16   : > { %s308_s20 = sshll.u32 %s300_s19, 4  ;;  %s1362_s22 = scalar_lea.sflag [#allocation5], %s274_s11  ;;  %s1360_s20 = int_to_ptr.vmem [resolvable:$true] %s308_s20 }
  0x17   : > { %p1367_p7 = pneg %p1344_p5 }
  0x19   : > { %s858_s18 = scalar_lea.hbm %s1630_s1, %s1612_s13  ;;  %s1098_s14 = scalar_lea.hbm %s1630_s1, 3072 }
  0x1a   : > { %s1358_s21 = scalar_lea.hbm %s858_s18, 512  ;;  %s1123_s23 = scalar_lea.hbm %s858_s18, 1024 }
  0x1b   : > { %p1094_p6 = scmp.ne.s32.totalorder %s1358_s21, %s1123_s23  ;;  %p1099_p10 = scmp.lt.u32.totalorder %s1358_s21, %s1630_s1 }
  0x1c   : > { %s1631_s29 = scalar_select %p1367_p7, 1, 0 }
  0x1d   : > { %p1096_p8 = pnand %p1367_p7, %p1094_p6  ;;  %p1100_p11 = scmp.lt.u32.totalorder %s1098_s14, %s1123_s23 }
  0x1e   : > { %p1102_p13 = scmp.lt.u32.totalorder %s1123_s23, %s1358_s21 }
  0x1f   : > { %p1097_p9 = pneg %p1096_p8  ;;  %p1101_p12 = por %p1100_p11, %p1099_p10 }
  0x21   : > { %p1103_p0 = por %p1102_p13, %p1101_p12 }
  0x23   : > { %p1104_p1 = pnand %p1103_p0, %p1097_p9 }
  0x25   : > { %1107 = shalt.err (!%p1104_p1)
}
  0x26   : > { %s1108_s11 = scalar_lea.vmem %s1351_s15, 512  ;;  %s1258_s18 = smov [#allocation4]  }
  0x27   : > { %p1109_p2 = scmp.ne.s32.totalorder %s1351_s15, %s1108_s11  ;;  %s1113_s19 = sshll.u32 %s1258_s18, 4  ;;  %s1114_s19 = int_to_ptr.vmem [resolvable:$false] %s1113_s19 }
  0x28   : > { %s1115_s30 = scalar_lea.vmem %s1114_s19, 1024  ;;  %p1116_p6 = scmp.lt.s32.totalorder %s1351_s15, %s1114_s19 }
  0x29   : > { %p1111_p3 = pnand %p1109_p2, %p1367_p7  ;;  %p1117_p8 = scmp.lt.s32.totalorder %s1115_s30, %s1108_s11 }
  0x2b   : > { %p1112_p4 = pneg %p1111_p3  ;;  %p1118_p10 = por %p1117_p8, %p1116_p6 }
  0x2d   : > { %p1119_p11 = pnand %p1118_p10, %p1112_p4 }
  0x2f   : > { %1122 = shalt.err (!%p1119_p11)
}
  0x30   : > { %s1608_s23 = smov 128   ;;  %s1610_s12 = smov 8  }
  0x31   : > { %1041 = dma.hbm_to_vmem [thread:$0]  (!%p1344_p5), %s1358_s21, 512, %s1351_s15, %s1362_s22, %s1608_s23, %s1608_s23, %s1610_s12  }
  0x32   : > { %s1395_s14 = sadd.s32 4294967295, %s1256_s27   ;;  %p44_p12 = scmp.ne.s32.totalorder %s1248_s25, %s1244_s24 }
  0x33   : > { %p1614_p9 = scmp.eq.s32.totalorder %s1395_s14, 0  ;;  %p941_p13 = scmp.ge.s32.totalorder %s1256_s27, 1 }
  0x34   : > { %p217_p0 = scmp.lt.s32.totalorder %s1256_s27, 3  ;;  %s1261_s15 = smov [#allocation7]  }
  0x35   : > { %p1404_p1 = por %p1614_p9, %p44_p12  ;;  %s232_s21 = sshll.u32 %s1261_s15, 4  ;;  %s1412_s21 = int_to_ptr.vmem [resolvable:$true] %s232_s21 }
  0x36   : > { %p1408_p2 = pnand %p941_p13, %p217_p0  ;;  %s944_s11 = sshll.u32 %s1342_s9, 4 }
  0x37   : > { %s1632_s16 = scalar_select %p1404_p1, 1, 0 }
  0x38   : > { %s1633_s17 = scalar_select %p1408_p2, 1, 0 }
  0x39   : > { %p1031_p3 = pneg %p1408_p2  ;;  %s945_s18 = smul.u32 768, %s1256_s27 }
  0x3a   : > { %s256_s19 = scalar_lea.vmem [#allocation2], %s944_s11  ;;  %s1124_s15 = scalar_lea.hbm %s1604_s4, 128 }
  0x3b   : > { %p1419_p4 = pnand %p1031_p3, %p1614_p9  ;;  %s264_s30 = sshll.u32 %s256_s19, 4  ;;  %s1424_s30 = int_to_ptr.vmem [resolvable:$true] %s264_s30 }
  0x3c   : > { %p1125_p6 = scmp.ne.s32.totalorder %s1604_s4, %s1124_s15  ;;  %p1131_p12 = scmp.lt.u32.totalorder %s1124_s15, %s1604_s4 }
  0x3d   : > { %p1126_p8 = pneg %p1419_p4 }
  0x3f   : > { %p1127_p10 = pnand %p1126_p8, %p1125_p6 }
  0x41   : > { %p1128_p11 = pneg %p1127_p10 }
  0x43   : > { %p1133_p13 = pnand %p1131_p12, %p1128_p11 }
  0x45   : > { %1136 = shalt.err (!%p1133_p13)
}
  0x46   : > { %s1137_s11 = scalar_lea.vmem %s1412_s21, 128  ;;  %p1145_p1 = scmp.lt.s32.totalorder %s1412_s21, %s1412_s21 }
  0x47   : > { %p1138_p0 = scmp.ne.s32.totalorder %s1412_s21, %s1137_s11  ;;  %p1146_p2 = scmp.lt.s32.totalorder %s1137_s11, %s1137_s11 }
  0x49   : > { %p1140_p3 = pnand %p1138_p0, %p1126_p8  ;;  %p1147_p5 = por %p1146_p2, %p1145_p1 }
  0x4b   : > { %p1141_p9 = pneg %p1140_p3 }
  0x4d   : > { %p1148_p7 = pnand %p1147_p5, %p1141_p9 }
  0x4f   : > { %1151 = shalt.err (!%p1148_p7)
}
  0x50   : > { %s1262_s1 = smov 64   ;;  %s1263_s26 = smov 4  }
  0x51   : > { %1034 = dma.hbm_to_vmem [thread:$0]  (!%p1419_p4), %s1604_s4, 128, %s1412_s21, [#allocation8], %s1262_s1, %s1262_s1, %s1263_s26  }
  0x52   : > { %s851_s19 = scalar_lea.hbm %s1600_s0, %s945_s18  ;;  %s1635_s15 = smul.u32 1536, %s1256_s27 }
  0x53   : > { %s1457_s6 = scalar_lea.hbm %s851_s19, 256  ;;  %s253_s8 = scalar_lea.sflag [#allocation3], %s1342_s9 }
  0x54   : > { %s1455_s7 = scalar_lea.hbm %s1602_s2, %s1635_s15  ;;  %s1182_s21 = scalar_lea.hbm %s851_s19, 512 }
  0x55   : > { %s1460_s24 = scalar_lea.hbm %s1455_s7, 512  ;;  %p1153_p5 = scmp.ne.s32.totalorder %s1457_s6, %s1182_s21 }
  0x56   : > { %p1636_p7 = scmp.ne.s32.totalorder %s1631_s29, 0  ;;  %s1157_s28 = scalar_lea.hbm %s1600_s0, 1536 }
  0x57   : > { %p1158_p2 = scmp.lt.u32.totalorder %s1457_s6, %s1600_s0  ;;  %p1159_p4 = scmp.lt.u32.totalorder %s1157_s28, %s1182_s21 }
  0x58   : > { %p1155_p9 = pnand %p1153_p5, %p1636_p7  ;;  %p1161_p8 = scmp.lt.u32.totalorder %s1182_s21, %s1457_s6 }
  0x59   : > { %p1160_p6 = por %p1159_p4, %p1158_p2 }
  0x5a   : > { %p1156_p1 = pneg %p1155_p9 }
  0x5b   : > { %p1162_p10 = por %p1161_p8, %p1160_p6 }
  0x5d   : > { %p1163_p11 = pnand %p1162_p10, %p1156_p1 }
  0x5f   : > { %1166 = shalt.err (!%p1163_p11)
}
  0x60   : > { %s1167_s13 = scalar_lea.vmem %s1424_s30, 256  ;;  %s1264_s23 = smov [#allocation2]  }
  0x61   : > { %p1168_p12 = scmp.ne.s32.totalorder %s1424_s30, %s1167_s13  ;;  %s1172_s12 = sshll.u32 %s1264_s23, 4  ;;  %s1173_s12 = int_to_ptr.vmem [resolvable:$false] %s1172_s12 }
  0x62   : > { %s1174_s19 = scalar_lea.vmem %s1173_s12, 512  ;;  %p1175_p3 = scmp.lt.s32.totalorder %s1424_s30, %s1173_s12 }
  0x63   : > { %p1170_p13 = pnand %p1168_p12, %p1636_p7  ;;  %p1176_p5 = scmp.lt.s32.totalorder %s1174_s19, %s1167_s13 }
  0x65   : > { %p1171_p0 = pneg %p1170_p13  ;;  %p1177_p9 = por %p1176_p5, %p1175_p3 }
  0x67   : > { %p1178_p2 = pnand %p1177_p9, %p1171_p0 }
  0x69   : > { %1181 = shalt.err (!%p1178_p2)
}
  0x6a   : > { %p1637_p1 = scmp.ne.s32.totalorder %s1629_s10, 0  ;;  %s1638_s15 = smov 8  }
  0x6b   : > { %s1639_s11 = smov 128   ;;  %s1213_s21 = scalar_lea.hbm %s1455_s7, 1024 }
  0x6c   : > { %1038 = dma.hbm_to_vmem [thread:$0]  (!%p1637_p1), %s1457_s6, 256, %s1424_s30, %s253_s8, %s1639_s11, %s1639_s11, %s1638_s15  }
  0x6d   : > { %p1184_p4 = scmp.ne.s32.totalorder %s1460_s24, %s1213_s21  ;;  %s1188_s28 = scalar_lea.hbm %s1602_s2, 3072 }
  0x6e   : > { %p1189_p10 = scmp.lt.u32.totalorder %s1460_s24, %s1602_s2  ;;  %p1190_p11 = scmp.lt.u32.totalorder %s1188_s28, %s1213_s21 }
  0x6f   : > { %p1186_p6 = pnand %p1184_p4, %p1636_p7  ;;  %p1192_p13 = scmp.lt.u32.totalorder %s1213_s21, %s1460_s24 }
  0x70   : > { %p1191_p12 = por %p1190_p11, %p1189_p10 }
  0x71   : > { %p1187_p8 = pneg %p1186_p6 }
  0x72   : > { %p1193_p0 = por %p1192_p13, %p1191_p12 }
  0x74   : > { %p1194_p3 = pnand %p1193_p0, %p1187_p8 }
  0x76   : > { %1197 = shalt.err (!%p1194_p3)
}
  0x77   : > { %s1198_s6 = scalar_lea.vmem %s1360_s20, 512  ;;  %s1265_s7 = smov [#allocation6]  }
  0x78   : > { %p1199_p5 = scmp.ne.s32.totalorder %s1360_s20, %s1198_s6  ;;  %s1203_s9 = sshll.u32 %s1265_s7, 4  ;;  %s1204_s9 = int_to_ptr.vmem [resolvable:$false] %s1203_s9 }
  0x79   : > { %s1205_s30 = scalar_lea.vmem %s1204_s9, 1024  ;;  %p1206_p4 = scmp.lt.s32.totalorder %s1360_s20, %s1204_s9 }
  0x7a   : > { %p1201_p9 = pnand %p1199_p5, %p1636_p7  ;;  %p1207_p6 = scmp.lt.s32.totalorder %s1205_s30, %s1198_s6 }
  0x7c   : > { %p1202_p2 = pneg %p1201_p9  ;;  %p1208_p10 = por %p1207_p6, %p1206_p4 }
  0x7e   : > { %p1209_p11 = pnand %p1208_p10, %p1202_p2 }
  0x80   : > { %1212 = shalt.err (!%p1209_p11)
}
  0x81   : > { %1044 = dma.hbm_to_vmem [thread:$0]  (!%p1637_p1), %s1460_s24, 512, %s1360_s20, %s1362_s22, %s1639_s11, %s1639_s11, %s1638_s15  }
  0x82   : > { %p1640_p7 = scmp.ne.s32.totalorder %s1633_s17, 0 }
  0x83   : > { %s322_s29 = sand.u32 (!%p1640_p7), 1, %s1248_s25   ;;  %p1641_p8 = scmp.ne.s32.totalorder (!%p1640_p7), %s1632_s16, 0 }
  0x84   : > { %320 = sbr.rel (%p1640_p7) target bundleno = 843 (0x34b), region = 48  ;;  %s951_s8 = sshll.u32 (!%p1640_p7), %s322_s29, 4 }
  0x85   : > { %s323_s13 = scalar_lea.sflag (!%p1640_p7), [#allocation3], %s322_s29  ;;  %s326_s23 = scalar_lea.vmem (!%p1640_p7), [#allocation2], %s951_s8 }
  0x8b   : > { %1231 = dma.done.wait (%p1641_p8), %s323_s13, 256  }
  0x8c   : > { %1233 = vsyncadd (%p1641_p8), %s323_s13, 4294967040  ;;  %s331_s10 = sand.u32 1, %s1395_s14   ;;  %s952_s12 = sshll.u32 %s322_s29, 5 }
  0x8d   : > { %s332_s19 = scalar_lea.sflag [#allocation5], %s331_s10  ;;  %s1521_s20 = scalar_lea.vmem [#allocation4], %s952_s12 }
  0x8e   : > { %1235 = dma.done.wait (%p1641_p8), %s332_s19, 1024  }
  0x8f   : > { %1237 = vsyncadd (%p1641_p8), %s332_s19, 4294966272  ;;  %s1527_s22 = scalar_lea.vmem [#allocation6], %s952_s12  ;;  %p1642_p1 = scmp.eq.s32.totalorder %s1395_s14, 0 }
  0x91   : > { %1239 = dma.done.wait (%p1642_p1), [#allocation8], 128   ;;  %p1643_p12 = pmov %p1642_p1 }
  0x92   : > { %v404_v0 = vld [vmem:[%s326_s23] sm:$0xff]  ;;  %v405_v1 = vld [vmem:[%s326_s23 + $0x8] sm:$0xff]  ;;  %vm417_vm0 = vcmask 130048   ;;  %s1644_s26 = sld [smem:[#allocation16_spill]]  ;;  %v1266_v21 = vmov 1065369472  }
  0x93   : > { %1241 = vsyncadd (%p1643_p12), [#allocation8], 4294967168  ;;  %v406_v2 = vpack.c.bf16 %v405_v1, %v404_v0  ;;  %v1087_v3 = vld [vmem:[%s1603_s3] sm:$0xff]   ;;  %v1089_v5 = vld [vmem:[%s1603_s3 + $0x8] sm:$0xff]   ;;  %v1267_v49 = vmov 0.0   ;;  %p387_p13 = scmp.lt.s32.totalorder %s1395_s14, 1 }
  0x94   : > { %v1088_v4 = vld [vmem:[%s1605_s5] sm:$0xff]   ;;  %v1090_v6 = vld [vmem:[%s1605_s5 + $0x8] sm:$0xff]   ;;  %991 = vmatprep.mubr.msk.bf16.mxu0 %vm417_vm0, %v1087_v3  ;;  %v670_v22 = vld [vmem:[%s1527_s22 + $0x10] sm:$0xff]  ;;  %s1651_s9 = sld [smem:[#allocation17_spill]] }
  0x95   : > { %989 = vmatprep.subr.bf16.mxu0 %v406_v2  ;;  %995 = vmatprep.subr.bf16.mxu1 %v406_v2  ;;  %v1091_v7 = vld [vmem:[#allocation7] sm:$0xff]   ;;  %v674_v23 = vld [vmem:[%s1521_s20 + $0x10] sm:$0xff]  ;;  %v675_v28 = vld [vmem:[%s1521_s20 + $0x18] sm:$0xff]  ;;  %s1658_s14 = smov (!%p387_p13, %s1395_s14), 1 }
  0x96   : > { %990 = vmatpush3.bf16.msra.mxu0 %v406_v2  ;;  %996 = vmatpush3.bf16.msra.mxu1 %v406_v2  ;;  %v668_v24 = vld [vmem:[%s1527_s22] sm:$0xff]  ;;  %v671_v34 = vld [vmem:[%s1527_s22 + $0x18] sm:$0xff]  ;;  %v673_v53 = vld [vmem:[%s1521_s20 + $0x8] sm:$0xff] }
  0x97   : > { %997 = vmatprep.mubr.msk.bf16.mxu1 %vm417_vm0, %v1088_v4  ;;  %1001 = vmatprep.subr.bf16.mxu0 %v1091_v7  ;;  %v672_v25 = vld [vmem:[%s1521_s20] sm:$0xff]  ;;  %v669_v55 = vld [vmem:[%s1527_s22 + $0x8] sm:$0xff] }
  0x98   : > { %v1092_v8 = vld [vmem:[%s1644_s26] sm:$0xff]  }
  0x99   : > { %992 = vmatmul.mubr.msk.bf16.vlgmr.msra.gmra.mrb[0].mxu0 %vm417_vm0, %v1089_v5  ;;  %998 = vmatmul.mubr.msk.bf16.vlgmr.msra.gmra.mrb[0].mxu1 %vm417_vm0, %v1090_v6 }
  0x9a   : > { %1007 = vmatprep.subr.bf16.mxu1 %v1092_v8  ;;  %1002 = vmatpush3.bf16.msra.mxu0 %v1091_v7  ;;  %s389_s30 = scalar_lea.vmem %s1651_s9, %s1658_s14 }
  0x9b   : > { %1008 = vmatpush3.bf16.msra.mxu1 %v1092_v8  ;;  %1013 = vmatprep.subr.bf16.mxu0 %v1266_v21 }
 0x16c   : > { %v993_v9 = vpop.f32.mrb[0].mxu0  ;;  %v999_v10 = vpop.f32.mrb[0].mxu1 }
 0x16d   : > { %v458_v11 = vpop.f32.mrb[1].mxu0  ;;  %v523_v12 = vpop.f32.mrb[1].mxu1 }
 0x16e   : > { %v994_v13 = vpop.f32.mrb[2].mxu0  ;;  %v1000_v14 = vpop.f32.mrb[2].mxu1 }
 0x16f   : > { %v539_v15 = vpack.c.bf16 %v994_v13, %v993_v9  ;;  %v541_v16 = vpack.c.bf16 %v1000_v14, %v999_v10  ;;  %v461_v17 = vpop.f32.mrb[3].mxu0  ;;  %v526_v18 = vpop.f32.mrb[3].mxu1 }
 0x170   : > { %v538_v19 = vpack.c.bf16 %v461_v17, %v458_v11  ;;  %v540_v20 = vpack.c.bf16 %v526_v18, %v523_v12 }
 0x172   : > { %1003 = vmatprep.mubr.msk.bf16.mxu0 %vm417_vm0, %v538_v19  ;;  %1009 = vmatprep.mubr.msk.bf16.mxu1 %vm417_vm0, %v540_v20 }
 0x173   : > { %1004 = vmatmul.mubr.msk.bf16.vlgmr.msra.gmra.mrb[4].mxu0 %vm417_vm0, %v539_v15  ;;  %1010 = vmatmul.mubr.msk.bf16.vlgmr.msra.gmra.mrb[4].mxu1 %vm417_vm0, %v541_v16 }
 0x174   : > { %1014 = vmatpush3.bf16.msra.mxu0 %v1266_v21 }
 0x175   : > { %1015 = vmatprep.subr.bf16.mxu0 %v1266_v21 }
 0x178   : > { %1016 = vmatpush3.bf16.msra.mxu0 %v1266_v21 }
 0x246   : > { %v1005_v26 = vpop.f32.mrb[4].mxu0  ;;  %v1011_v27 = vpop.f32.mrb[4].mxu1 }
 0x247   : > { %v678_v29 = vsub.f32 %v674_v23, %v1005_v26  ;;  %v710_v30 = vsub.f32 %v670_v22, %v1005_v26  ;;  %v666_v31 = vsub.f32 %v1011_v27, %v1005_v26  ;;  %v588_v32 = vpop.f32.mrb[5].mxu0  ;;  %v649_v33 = vpop.f32.mrb[5].mxu1 }
 0x248   : > { %v676_v35 = vsub.f32 %v672_v25, %v588_v32  ;;  %v708_v36 = vsub.f32 %v668_v24, %v588_v32  ;;  %v664_v37 = vsub.f32 %v649_v33, %v588_v32  ;;  %v1006_v38 = vpop.f32.mrb[6].mxu0  ;;  %v1012_v39 = vpop.f32.mrb[6].mxu1 }
 0x249   : > { %v682_v40 = vmul.f32 %v678_v29, %v666_v31  ;;  %v714_v41 = vmul.f32 %v710_v30, %v666_v31  ;;  %v679_v42 = vsub.f32 %v675_v28, %v1006_v38  ;;  %v591_v43 = vpop.f32.mrb[7].mxu0  ;;  %v652_v44 = vpop.f32.mrb[7].mxu1  ;;  %v711_v47 = vsub.f32 %v671_v34, %v1006_v38 }
 0x24a   : > { %v680_v45 = vmul.f32 %v676_v35, %v664_v37  ;;  %v712_v46 = vmul.f32 %v708_v36, %v664_v37  ;;  %v667_v48 = vsub.f32 %v1012_v39, %v1006_v38  ;;  %v677_v61 = vsub.f32 %v673_v53, %v591_v43 }
 0x24b   : > { %vm686_vm1 = vcmp.eq.f32.partialorder %v682_v40, 0.0  ;;  %vm694_vm2 = vcmp.lt.f32.partialorder %v682_v40, 0.0  ;;  %vm698_vm3 = vcmp.eq.f32.partialorder %v682_v40, 0.5  ;;  %vm718_vm4 = vcmp.eq.f32.partialorder %v714_v41, 0.0 }
 0x24c   : > { %v690_v50 = vsel %vm686_vm1, 0.5, %v1267_v49  ;;  %vm1562_vm5 = vmor %vm694_vm2, %vm698_vm3  ;;  %v722_v52 = vsel %vm718_vm4, 0.5, %v1267_v49  ;;  %vm726_vm6 = vcmp.lt.f32.partialorder %v714_v41, 0.0  ;;  %vm730_vm7 = vcmp.eq.f32.partialorder %v714_v41, 0.5 }
 0x24d   : > { %v706_v54 = vsel %vm1562_vm5, 1.0, %v690_v50  ;;  %vm734_vm8 = vmor %vm726_vm6, %vm730_vm7  ;;  %vm684_vm9 = vcmp.eq.f32.partialorder %v680_v45, 0.0  ;;  %vm692_vm10 = vcmp.lt.f32.partialorder %v680_v45, 0.0  ;;  %vm696_vm11 = vcmp.eq.f32.partialorder %v680_v45, 0.5 }
 0x24e   : > { %v738_v56 = vsel %vm734_vm8, 1.0, %v722_v52  ;;  %v688_v57 = vsel %vm684_vm9, 0.5, %v1267_v49  ;;  %vm1570_vm12 = vmor %vm692_vm10, %vm696_vm11  ;;  %vm716_vm13 = vcmp.eq.f32.partialorder %v712_v46, 0.0  ;;  %vm724_vm14 = vcmp.lt.f32.partialorder %v712_v46, 0.0 }
 0x24f   : > { %v742_v59 = vsub.f32 %v706_v54, %v738_v56  ;;  %v720_v60 = vsel %vm716_vm13, 0.5, %v1267_v49  ;;  %vm728_vm15 = vcmp.eq.f32.partialorder %v712_v46, 0.5  ;;  %v683_v63 = vmul.f32 %v679_v42, %v667_v48 }
 0x250   : > { %vm1574_vm0 = vmor %vm724_vm14, %vm728_vm15  ;;  %v715_v0 = vmul.f32 %v711_v47, %v667_v48  ;;  %v709_v1 = vsub.f32 %v669_v55, %v591_v43  ;;  %v665_v2 = vsub.f32 %v652_v44, %v591_v43  ;;  %v704_v3 = vsel %vm1570_vm12, 1.0, %v688_v57 }
 0x251   : > { %v736_v4 = vsel %vm1574_vm0, 1.0, %v720_v60  ;;  %vm687_vm1 = vcmp.eq.f32.partialorder %v683_v63, 0.0  ;;  %vm695_vm2 = vcmp.lt.f32.partialorder %v683_v63, 0.0  ;;  %vm699_vm3 = vcmp.eq.f32.partialorder %v683_v63, 0.5 }
 0x252   : > { %vm719_vm4 = vcmp.eq.f32.partialorder %v715_v0, 0.0  ;;  %v691_v5 = vsel %vm687_vm1, 0.5, %v1267_v49  ;;  %vm703_vm5 = vmor %vm695_vm2, %vm699_vm3  ;;  %vm727_vm6 = vcmp.lt.f32.partialorder %v715_v0, 0.0  ;;  %vm731_vm7 = vcmp.eq.f32.partialorder %v715_v0, 0.5 }
 0x253   : > { %v723_v6 = vsel %vm719_vm4, 0.5, %v1267_v49  ;;  %v707_v7 = vsel %vm703_vm5, 1.0, %v691_v5  ;;  %vm735_vm8 = vmor %vm727_vm6, %vm731_vm7  ;;  %v681_v8 = vmul.f32 %v677_v61, %v665_v2  ;;  %v713_v9 = vmul.f32 %v709_v1, %v665_v2 }
 0x254   : > { %v740_v10 = vsub.f32 %v704_v3, %v736_v4  ;;  %v739_v11 = vsel %vm735_vm8, 1.0, %v723_v6  ;;  %v746_v14 = vmul.f32 %v742_v59, %v742_v59  ;;  %vm750_vm1 = vcmask 261120  }
 0x255   : > { %v743_v12 = vsub.f32 %v707_v7, %v739_v11  ;;  %vm685_vm9 = vcmp.eq.f32.partialorder %v681_v8, 0.0  ;;  %vm693_vm10 = vcmp.lt.f32.partialorder %v681_v8, 0.0  ;;  %vm697_vm11 = vcmp.eq.f32.partialorder %v681_v8, 0.5 }
 0x256   : > { %v689_v13 = vsel %vm685_vm9, 0.5, %v1267_v49  ;;  %vm701_vm12 = vmor %vm693_vm10, %vm697_vm11  ;;  %vm717_vm13 = vcmp.eq.f32.partialorder %v713_v9, 0.0  ;;  %vm725_vm14 = vcmp.lt.f32.partialorder %v713_v9, 0.0  ;;  %vm729_vm15 = vcmp.eq.f32.partialorder %v713_v9, 0.5 }
 0x257   : > { %v747_v15 = vmul.f32 %v743_v12, %v743_v12  ;;  %v705_v16 = vsel %vm701_vm12, 1.0, %v689_v13  ;;  %v721_v17 = vsel %vm717_vm13, 0.5, %v1267_v49  ;;  %vm733_vm0 = vmor %vm725_vm14, %vm729_vm15  ;;  %v744_v21 = vmul.f32 %v740_v10, %v740_v10 }
 0x258   : > { %v737_v18 = vsel %vm733_vm0, 1.0, %v721_v17  ;;  %vm806_vm2 = vcmask 7168   ;;  %vm820_vm3 = vcmask 0  }
 0x259   : > { %v741_v19 = vsub.f32 %v705_v16, %v737_v18  ;;  %v749_v20 = vpack.c.bf16 %v747_v15, %v746_v14 }
 0x25b   : > { %v745_v22 = vmul.f32 %v741_v19, %v741_v19 }
 0x25d   : > { %v748_v23 = vpack.c.bf16 %v745_v22, %v744_v21 }
 0x25f   : > { %1017 = vmatprep.mubr.msk.bf16.mxu0 %vm750_vm1, %v748_v23 }
 0x260   : > { %1018 = vmatmul.mubr.msk.bf16.vlgmr.msra.gmra.mrb[8].mxu0 %vm750_vm1, %v749_v20 }
 0x333   : > { %v1019_v24 = vpop.f32.mrb[8].mxu0 }
 0x334   : > { %v791_v25 = vpop.f32.mrb[9].mxu0  ;;  %v810_v31 = vsel %vm806_vm2, %v1019_v24, 0.0 }
 0x335   : > { %v1020_v26 = vpop.f32.mrb[10].mxu0  ;;  %v807_v28 = vsel %vm806_vm2, %v791_v25, 0.0 }
 0x336   : > { %v794_v27 = vpop.f32.mrb[11].mxu0  ;;  %v812_v33 = vsel %vm806_vm2, %v1020_v26, 0.0 }
 0x337   : > { %v808_v29 = vsel %vm806_vm2, %v794_v27, 0.0 }
 0x338   : > { %v809_v30 = vadd.f32 %v808_v29, %v807_v28 }
 0x33a   : > { %v811_v32 = vadd.f32 %v810_v31, %v809_v30 }
 0x33c   : > { %v813_v34 = vadd.f32 %v812_v33, %v811_v32 }
 0x33e   : > { %v814_v35 = vrot.slane %v813_v34, 4 }
 0x340   : > { %v815_v36 = vadd.f32 %v814_v35, %v813_v34 }
 0x342   : > { %v816_v37 = vrot.slane %v815_v36, 2 }
 0x344   : > { %v817_v38 = vadd.f32 %v816_v37, %v815_v36 }
 0x346   : > { %v818_v39 = vrot.slane %v817_v38, 1 }
 0x348   : > { %v819_v40 = vadd.f32 %v818_v39, %v817_v38 }
 0x34a   : > { %821 = vst.msk [vmem:[%s389_s30] sm:$0x1] %vm820_vm3, %v819_v40 }
 0x34b PF: > { %s1652_s27 = sld [smem:[#allocation13_spill]]  ;;  %s1653_s29 = sld [smem:[#allocation12_spill]] }
 0x34c   : > { %s1654_s26 = sld [smem:[#allocation14_spill]]  ;;  %s1655_s24 = smov %s1248_s25 }
 0x351   : > { %p21_p0 = scmp.ge.s32.totalorder %s1652_s27, 4   ;;  %s1656_s25 = smov %s1653_s29 }
 0x353   :  { %23 = sbr.rel (!%p21_p0) target bundleno = 10 (0xa), region = 116 }
 0x35a   :  { %839 = vsyncpa [#allocation3], 1 }
 0x35b   :  { %841 = vsyncpa [#allocation3 + $0x1], 1 }
 0x35c   :  { %842 = vsyncpa [#allocation5], 1 }
 0x35d   :  { %844 = vsyncpa [#allocation5 + $0x1], 1 }
 0x35e   :  { %845 = vsyncpa [#allocation8], 1 }

</bundles_post_ra>
